<compile_context>
chip_gen: v7x
topology: tpu7x:2x2x1
jax: 0.10.0
libtpu: 0.0.40
codegen_flags: <defaults>
</compile_context>

<pallas_src>
import jax
import jax.numpy as jnp
from jax.experimental import pallas as pl
from jax.experimental.pallas import tpu as pltpu


# Poses per grid step -> 4 * 128 = 512 lanes per block (multiple of 128, so
# every store is a full-width unmasked vst along the lane dimension).
_POSES_PER_TILE = 128
_LANE_TILE = 4 * _POSES_PER_TILE


def _apply_pose_kernel(exp_ref, x_ref, out_ref):
    """out = exp_i @ x for a lane-dense slab of poses.

    exp_ref : SMEM (16,) f32 -- exp_i flattened row-major.
    x_ref   : VMEM (4, _LANE_TILE) f32 -- columns [4b:4b+4] hold pose b.
    out_ref : VMEM (4, _LANE_TILE) f32.
    """
    x = x_ref[...]                       # (4, T)
    x0 = x[0:1, :]
    x1 = x[1:2, :]
    x2 = x[2:3, :]
    x3 = x[3:4, :]

    # 16 scalar reads from SMEM, 16 scalar*row FMAs on the VPU (no MXU, no
    # constant arrays, no cross-lane broadcasts).  Unrolled Python loop.
    for r in range(4):
        e0 = exp_ref[4 * r + 0]
        e1 = exp_ref[4 * r + 1]
        e2 = exp_ref[4 * r + 2]
        e3 = exp_ref[4 * r + 3]
        out_ref[r:r + 1, :] = e0 * x0 + e1 * x1 + e2 * x2 + e3 * x3


def _build_exp_i(theta, w, v):
    """Parameter-only SE(3) exponential map, built once per call (pure JAX).

    Mirrors the PyTorch module's formula exactly (sin/cos form).
    """
    theta = jnp.asarray(theta, jnp.float32)
    w = jnp.asarray(w, jnp.float32)
    v = jnp.asarray(v, jnp.float32)
    zero = jnp.zeros((), jnp.float32)

    ws = jnp.stack([
        jnp.stack([zero, -w[2], w[1]]),
        jnp.stack([w[2], zero, -w[0]]),
        jnp.stack([-w[1], w[0], zero]),
    ])                                                        # (3, 3) skew
    ws2 = ws @ ws
    eye = jnp.eye(3, dtype=jnp.float32)
    sin_t = jnp.sin(theta)
    cos_t = jnp.cos(theta)

    rot = eye + sin_t * ws + (1.0 - cos_t) * ws2
    trans = (eye * theta + (1.0 - cos_t) * ws + (theta - sin_t) * ws2) @ v

    exp_i = jnp.zeros((4, 4), jnp.float32)
    exp_i = exp_i.at[:3, :3].set(rot)
    exp_i = exp_i.at[:3, 3].set(trans)
    exp_i = exp_i.at[3, 3].set(1.0)
    return exp_i


@jax.jit
def camera_transf_forward(theta, w, v, x):
    """Forward pass of camera_transf.

    x: (4, 4) single pose (module signature) or (B, 4, 4) batch of poses.
    Returns exp_i @ x with the same leading shape.
    """
    exp_i = _build_exp_i(theta, w, v)                         # (4, 4), once per call

    single = (x.ndim == 2)
    xb = (x[None] if single else x).astype(jnp.float32)       # (B, 4, 4)
    B = xb.shape[0]

    # Pad the batch to a multiple of the lane-tile pose count.
    Bp = -(-B // _POSES_PER_TILE) * _POSES_PER_TILE
    if Bp != B:
        xb = jnp.pad(xb, ((0, Bp - B), (0, 0), (0, 0)))

    # Lane-dense slab: slab[r, 4*b + c] = xb[b, r, c]  ->  shape (4, 4*Bp).
    x_slab = jnp.transpose(xb, (1, 0, 2)).reshape(4, 4 * Bp)

    grid = (4 * Bp // _LANE_TILE,)
    out_slab = pl.pallas_call(
        _apply_pose_kernel,
        out_shape=jax.ShapeDtypeStruct((4, 4 * Bp), jnp.float32),
        grid=grid,
        in_specs=[
            # exp_i scalars: whole (16,) array in SMEM every step (no concat,
            # no padded VMEM tile for 16 scalars).
            pl.BlockSpec(memory_space=pltpu.MemorySpace.SMEM),
            # x slab: lane-dense (4, 512) tiles streamed through VMEM.
            pl.BlockSpec((4, _LANE_TILE), lambda i: (0, i)),
        ],
        out_specs=pl.BlockSpec((4, _LANE_TILE), lambda i: (0, i)),
        compiler_params=pltpu.CompilerParams(
            dimension_semantics=("parallel",)),   # shards tiles across v7x's 2 TCs
    )(exp_i.reshape(16), x_slab)

    out = out_slab.reshape(4, Bp, 4).transpose(1, 0, 2)[:B]   # (B, 4, 4)
    return out[0] if single else out
    # TODO(synk): for very large pose batches on v6e, bump _POSES_PER_TILE
    # (512/1024-lane tiles) per the 0.35 us/step amortization guidance.


def _reference_forward(theta, w, v, x):
    """Pure-JAX reference mirroring the PyTorch module (supports batched x)."""
    theta = jnp.asarray(theta, jnp.float32)
    w = jnp.asarray(w, jnp.float32)
    v = jnp.asarray(v, jnp.float32)
    ws = jnp.array([[0.0, -w[2], w[1]],
                    [w[2], 0.0, -w[0]],
                    [-w[1], w[0], 0.0]], dtype=jnp.float32)
    ws2 = ws @ ws
    eye = jnp.eye(3, dtype=jnp.float32)
    rot = eye + jnp.sin(theta) * ws + (1.0 - jnp.cos(theta)) * ws2
    trans = (eye * theta + (1.0 - jnp.cos(theta)) * ws
             + (theta - jnp.sin(theta)) * ws2) @ v
    exp_i = jnp.zeros((4, 4), jnp.float32)
    exp_i = exp_i.at[:3, :3].set(rot)
    exp_i = exp_i.at[:3, 3].set(trans)
    exp_i = exp_i.at[3, 3].set(1.0)
    return jnp.einsum("ij,...jk->...ik", exp_i, x.astype(jnp.float32))


if __name__ == "__main__":
    key = jax.random.PRNGKey(0)
    kw, kv, kt, kx = jax.random.split(key, 4)

    # Parameters: normal(0, 1e-6) like the module's __init__ (deterministic here).
    w = (1e-6 * jax.random.normal(kw, (3,))).astype(jnp.float32)
    v = (1e-6 * jax.random.normal(kv, (3,))).astype(jnp.float32)
    theta = (1e-6 * jax.random.normal(kt, ())).astype(jnp.float32)

    # Batched poses: lane-dense Pallas path (amortizes call/step overhead).
    B = 256
    x_batch = jax.random.normal(kx, (B, 4, 4), dtype=jnp.float32)

    out_batch = jax.block_until_ready(camera_transf_forward(theta, w, v, x_batch))
    ref_batch = _reference_forward(theta, w, v, x_batch)
    assert out_batch.shape == (B, 4, 4)
    assert jnp.allclose(out_batch, ref_batch, atol=1e-5, rtol=1e-5)

    # Single-pose path matching the original module signature (x: (4, 4)).
    x_single = x_batch[0]
    out_single = jax.block_until_ready(camera_transf_forward(theta, w, v, x_single))
    ref_single = _reference_forward(theta, w, v, x_single)
    assert out_single.shape == (4, 4)
    assert jnp.allclose(out_single, ref_single, atol=1e-5, rtol=1e-5)

    print("KERNEL_OK")
</pallas_src>

<mosaic_0001>
module attributes {stable_mosaic.version = 11 : i64} {
  func.func @_apply_pose_kernel(%arg0: i32, %arg1: memref<16xf32, #tpu.memory_space<smem>>, %arg2: memref<4x512xf32, #tpu.memory_space<vmem>>, %arg3: memref<4x512xf32, #tpu.memory_space<vmem>>) attributes {dimension_semantics = [#tpu.dimension_semantics<parallel>], iteration_bounds = array<i64: 2>, scalar_prefetch = 0 : i64, scratch_operands = 0 : i64, tpu.core_type = #tpu.core_type<tc>, window_params = [{transform_indices = @transform_0, window_bounds = array<i64: 16>}, {transform_indices = @transform_1, window_bounds = array<i64: 4, 512>}, {transform_indices = @transform_2, window_bounds = array<i64: 4, 512>}]} {
    %c0 = arith.constant 0 : index
    %c0_0 = arith.constant 0 : index
    %0 = vector.load %arg2[%c0, %c0_0] : memref<4x512xf32, #tpu.memory_space<vmem>>, vector<4x512xf32>
    %1 = vector.extract_strided_slice %0 {offsets = [0, 0], sizes = [1, 512], strides = [1, 1]} : vector<4x512xf32> to vector<1x512xf32>
    %2 = vector.extract_strided_slice %0 {offsets = [1, 0], sizes = [1, 512], strides = [1, 1]} : vector<4x512xf32> to vector<1x512xf32>
    %3 = vector.extract_strided_slice %0 {offsets = [2, 0], sizes = [1, 512], strides = [1, 1]} : vector<4x512xf32> to vector<1x512xf32>
    %4 = vector.extract_strided_slice %0 {offsets = [3, 0], sizes = [1, 512], strides = [1, 1]} : vector<4x512xf32> to vector<1x512xf32>
    %c0_1 = arith.constant 0 : index
    %5 = memref.load %arg1[%c0_1] : memref<16xf32, #tpu.memory_space<smem>>
    %c1 = arith.constant 1 : index
    %6 = memref.load %arg1[%c1] : memref<16xf32, #tpu.memory_space<smem>>
    %c2 = arith.constant 2 : index
    %7 = memref.load %arg1[%c2] : memref<16xf32, #tpu.memory_space<smem>>
    %c3 = arith.constant 3 : index
    %8 = memref.load %arg1[%c3] : memref<16xf32, #tpu.memory_space<smem>>
    %9 = vector.broadcast %5 : f32 to vector<1x512xf32>
    %10 = arith.mulf %9, %1 : vector<1x512xf32>
    %11 = vector.broadcast %6 : f32 to vector<1x512xf32>
    %12 = arith.mulf %11, %2 : vector<1x512xf32>
    %13 = arith.addf %10, %12 : vector<1x512xf32>
    %14 = vector.broadcast %7 : f32 to vector<1x512xf32>
    %15 = arith.mulf %14, %3 : vector<1x512xf32>
    %16 = arith.addf %13, %15 : vector<1x512xf32>
    %17 = vector.broadcast %8 : f32 to vector<1x512xf32>
    %18 = arith.mulf %17, %4 : vector<1x512xf32>
    %19 = arith.addf %16, %18 : vector<1x512xf32>
    %c0_2 = arith.constant 0 : index
    %c0_3 = arith.constant 0 : index
    %20 = vector.load %arg3[%c0_2, %c0_3] : memref<4x512xf32, #tpu.memory_space<vmem>>, vector<1x512xf32>
    tpu.vector_store %arg3[%c0_2, %c0_3], %19 {strides = array<i32>} : memref<4x512xf32, #tpu.memory_space<vmem>>, vector<1x512xf32>,
    %c4 = arith.constant 4 : index
    %21 = memref.load %arg1[%c4] : memref<16xf32, #tpu.memory_space<smem>>
    %c5 = arith.constant 5 : index
    %22 = memref.load %arg1[%c5] : memref<16xf32, #tpu.memory_space<smem>>
    %c6 = arith.constant 6 : index
    %23 = memref.load %arg1[%c6] : memref<16xf32, #tpu.memory_space<smem>>
    %c7 = arith.constant 7 : index
    %24 = memref.load %arg1[%c7] : memref<16xf32, #tpu.memory_space<smem>>
    %25 = vector.broadcast %21 : f32 to vector<1x512xf32>
    %26 = arith.mulf %25, %1 : vector<1x512xf32>
    %27 = vector.broadcast %22 : f32 to vector<1x512xf32>
    %28 = arith.mulf %27, %2 : vector<1x512xf32>
    %29 = arith.addf %26, %28 : vector<1x512xf32>
    %30 = vector.broadcast %23 : f32 to vector<1x512xf32>
    %31 = arith.mulf %30, %3 : vector<1x512xf32>
    %32 = arith.addf %29, %31 : vector<1x512xf32>
    %33 = vector.broadcast %24 : f32 to vector<1x512xf32>
    %34 = arith.mulf %33, %4 : vector<1x512xf32>
    %35 = arith.addf %32, %34 : vector<1x512xf32>
    %c1_4 = arith.constant 1 : index
    %c0_5 = arith.constant 0 : index
    %36 = vector.load %arg3[%c1_4, %c0_5] : memref<4x512xf32, #tpu.memory_space<vmem>>, vector<1x512xf32>
    tpu.vector_store %arg3[%c1_4, %c0_5], %35 {strides = array<i32>} : memref<4x512xf32, #tpu.memory_space<vmem>>, vector<1x512xf32>,
    %c8 = arith.constant 8 : index
    %37 = memref.load %arg1[%c8] : memref<16xf32, #tpu.memory_space<smem>>
    %c9 = arith.constant 9 : index
    %38 = memref.load %arg1[%c9] : memref<16xf32, #tpu.memory_space<smem>>
    %c10 = arith.constant 10 : index
    %39 = memref.load %arg1[%c10] : memref<16xf32, #tpu.memory_space<smem>>
    %c11 = arith.constant 11 : index
    %40 = memref.load %arg1[%c11] : memref<16xf32, #tpu.memory_space<smem>>
    %41 = vector.broadcast %37 : f32 to vector<1x512xf32>
    %42 = arith.mulf %41, %1 : vector<1x512xf32>
    %43 = vector.broadcast %38 : f32 to vector<1x512xf32>
    %44 = arith.mulf %43, %2 : vector<1x512xf32>
    %45 = arith.addf %42, %44 : vector<1x512xf32>
    %46 = vector.broadcast %39 : f32 to vector<1x512xf32>
    %47 = arith.mulf %46, %3 : vector<1x512xf32>
    %48 = arith.addf %45, %47 : vector<1x512xf32>
    %49 = vector.broadcast %40 : f32 to vector<1x512xf32>
    %50 = arith.mulf %49, %4 : vector<1x512xf32>
    %51 = arith.addf %48, %50 : vector<1x512xf32>
    %c2_6 = arith.constant 2 : index
    %c0_7 = arith.constant 0 : index
    %52 = vector.load %arg3[%c2_6, %c0_7] : memref<4x512xf32, #tpu.memory_space<vmem>>, vector<1x512xf32>
    tpu.vector_store %arg3[%c2_6, %c0_7], %51 {strides = array<i32>} : memref<4x512xf32, #tpu.memory_space<vmem>>, vector<1x512xf32>,
    %c12 = arith.constant 12 : index
    %53 = memref.load %arg1[%c12] : memref<16xf32, #tpu.memory_space<smem>>
    %c13 = arith.constant 13 : index
    %54 = memref.load %arg1[%c13] : memref<16xf32, #tpu.memory_space<smem>>
    %c14 = arith.constant 14 : index
    %55 = memref.load %arg1[%c14] : memref<16xf32, #tpu.memory_space<smem>>
    %c15 = arith.constant 15 : index
    %56 = memref.load %arg1[%c15] : memref<16xf32, #tpu.memory_space<smem>>
    %57 = vector.broadcast %53 : f32 to vector<1x512xf32>
    %58 = arith.mulf %57, %1 : vector<1x512xf32>
    %59 = vector.broadcast %54 : f32 to vector<1x512xf32>
    %60 = arith.mulf %59, %2 : vector<1x512xf32>
    %61 = arith.addf %58, %60 : vector<1x512xf32>
    %62 = vector.broadcast %55 : f32 to vector<1x512xf32>
    %63 = arith.mulf %62, %3 : vector<1x512xf32>
    %64 = arith.addf %61, %63 : vector<1x512xf32>
    %65 = vector.broadcast %56 : f32 to vector<1x512xf32>
    %66 = arith.mulf %65, %4 : vector<1x512xf32>
    %67 = arith.addf %64, %66 : vector<1x512xf32>
    %c3_8 = arith.constant 3 : index
    %c0_9 = arith.constant 0 : index
    %68 = vector.load %arg3[%c3_8, %c0_9] : memref<4x512xf32, #tpu.memory_space<vmem>>, vector<1x512xf32>
    tpu.vector_store %arg3[%c3_8, %c0_9], %67 {strides = array<i32>} : memref<4x512xf32, #tpu.memory_space<vmem>>, vector<1x512xf32>,
    return
  }
  func.func @transform_0(%arg0: i32) -> i32 {
    %c0_i32 = arith.constant 0 : i32
    %c0_i32_0 = arith.constant 0 : i32
    return %c0_i32 : i32
  }
  func.func @transform_1(%arg0: i32) -> (i32, i32) {
    %c0_i32 = arith.constant 0 : i32
    %c0_i32_0 = arith.constant 0 : i32
    return %c0_i32, %arg0 : i32, i32
  }
  func.func @transform_2(%arg0: i32) -> (i32, i32) {
    %c0_i32 = arith.constant 0 : i32
    %c0_i32_0 = arith.constant 0 : i32
    return %c0_i32, %arg0 : i32, i32
  }
}

</mosaic_0001>

<bundles_post_ra>
// kernel: camera_transf_forward.1
= control target key start
LH: loop header
LB: loop body
LE: loop exit
PB: predicated region body
PF: predicated region fallthrough
CT: control target
= control target key end

     0   :  { %7 = vsyncpa [#allocation3], 0  ;;  %s645_s9 = smov 0   ;;  %s794_s0 = inlined_call_operand.vmem [shape: f32[16], index: 0, kind: input, shape index: {}]   ;;  %s795_s1 = inlined_call_operand.vmem [shape: f32[4,1024], index: 1, kind: input, shape index: {}]   ;;  %s796_s2 = inlined_call_operand.vmem [shape: f32[4,1024], index: 2, kind: output, shape index: {}]  }
   0x1 LB: > { %s526_s10 = sadd.s32 4294967295, %s626_s9   ;;  %p528_p0 = scmp.ge.s32.totalorder %s626_s9, 1  ;;  %s626_s9 = sphi %s645_s9, %s13_s9  }
   0x2   : > { %p91_p1 = scmp.lt.s32.totalorder %s626_s9, 3  ;;  %s104_s13 = sshll.u32 %s794_s0, 4  ;;  %s105_s13 = int_to_ptr.vmem [resolvable:$true] %s104_s13 }
   0x3   : > { %p660_p3 = scmp.eq.s32.totalorder %s526_s10, 0  ;;  %s601_s16 = scalar_lea.vmem %s105_s13, 16 }
   0x4   : > { %p656_p2 = pnand %p528_p0, %p91_p1  ;;  %p602_p6 = scmp.ne.s32.totalorder %s105_s13, %s601_s16 }
   0x5   : > { %p609_p10 = scmp.lt.s32.totalorder %s105_s13, %s105_s13  ;;  %p610_p11 = scmp.lt.s32.totalorder %s601_s16, %s601_s16 }
   0x6   : > { %p585_p4 = pneg %p656_p2 }
   0x7   : > { %p611_p12 = por %p610_p11, %p609_p10 }
   0x8   : > { %p586_p5 = pnand %p660_p3, %p585_p4 }
   0xa   : > { %p603_p7 = pneg %p586_p5 }
   0xc   : > { %p604_p8 = pnand %p603_p7, %p602_p6 }
   0xe   : > { %p605_p9 = pneg %p604_p8 }
  0x10   : > { %p612_p13 = pnand %p611_p12, %p605_p9 }
  0x12   : > { %615 = shalt.err (!%p612_p13)
}
  0x13   : > { %s628_s17 = smov [#allocation2]   ;;  %126 = sbr.rel (%p656_p2) target bundleno = 74 (0x4a), region = 28 }
  0x14   : > { %588 = dma.vmem_to_smem (!%p586_p5), %s105_s13, 16, %s628_s17, [#allocation3]  }
  0x1a   : > { %621 = dma.done.wait (%p660_p3), [#allocation3], 16  }
  0x1b   : > { %623 = vsyncadd (%p660_p3), [#allocation3], 4294967280 }
  0x1c   : > { %132 = sfence }
  0x1d   : > { %s533_s18 = sshll.u32 %s526_s10, 2  ;;  %s163_s19 = sld [smem:[#allocation2]]  ;;  %v629_v0 = vmov 1966171168   ;;  %v214_v2 = vlaneseq }
  0x1e   : > { %p150_p0 = scmp.lt.s32.totalorder %s533_s18, 7  ;;  %s537_s20 = sld [smem:[#allocation2 + $0x1]]  ;;  %v212_v1 = vunpack.c.l.s4 %v629_v0 }
  0x1f   : > { %s538_s21 = sld [smem:[#allocation2 + $0x2]]  ;;  %s539_s22 = sld [smem:[#allocation2 + $0x3]]  ;;  %v215_v4 = vshrl.u32 %v214_v2, 7  ;;  %vm710_vm0 = vcmp.lt.s32.totalorder %v214_v2, 512 }
  0x20   : > { %s802_s18 = smov (!%p150_p0, %s533_s18), 7  ;;  %s676_s23 = sld [smem:[#allocation2 + $0x4]]  ;;  %v213_v3 = vunpack.c.0.s8 %v212_v1 }
  0x21   : > { %s678_s24 = sld [smem:[#allocation2 + $0x5]]  ;;  %s534_s25 = sshll.u32 %s802_s18, 2 }
  0x22   : > { %s153_s28 = scalar_lea.vmem %s795_s1, %s534_s25  ;;  %s686_s29 = sld [smem:[#allocation2 + $0x6]]  ;;  %v702_v15 = vsub.s32 %v213_v3, %v215_v4 }
  0x23   : > { %v167_v5 = vstv %s163_s19  ;;  %v688_v6 = vld [vmem:[%s153_s28] sm:$0xff]  ;;  %v690_v7 = vld [vmem:[%s153_s28 + $0x8] sm:$0xff]  ;;  %s692_s30 = sld [smem:[#allocation2 + $0x7]]  ;;  %s694_s3 = sld [smem:[#allocation2 + $0x8]] }
  0x24   : > { %v170_v8 = vstv %s537_s20  ;;  %v168_v9 = vmul.f32 %v167_v5, %v688_v6  ;;  %v169_v10 = vmul.f32 %v167_v5, %v690_v7  ;;  %s700_s4 = sld [smem:[#allocation2 + $0x9]]  ;;  %s716_s5 = sld [smem:[#allocation2 + $0xa]] }
  0x25   : > { %v171_v11 = vmul.f32 %v170_v8, %v688_v6  ;;  %v172_v12 = vmul.f32 %v170_v8, %v690_v7  ;;  %v183_v13 = vstv %s538_s21  ;;  %v196_v14 = vstv %s539_s22  ;;  %s722_s6 = sld [smem:[#allocation2 + $0xb]]  ;;  %s732_s7 = sld [smem:[#allocation2 + $0xc]] }
  0x26   : > { %v184_v18 = vmul.f32 %v183_v13, %v688_v6  ;;  %v185_v19 = vmul.f32 %v183_v13, %v690_v7  ;;  %v197_v20 = vmul.f32 %v196_v14, %v688_v6  ;;  %v198_v21 = vmul.f32 %v196_v14, %v690_v7  ;;  %s734_s8 = sld [smem:[#allocation2 + $0xd]]  ;;  %s741_s12 = scalar_lea.vmem %s796_s2, %s534_s25 }
  0x27   : > { %v540_v16 = vrot.slane %v171_v11, 9  ;;  %v541_v17 = vrot.slane %v172_v12, 9  ;;  %v243_v22 = vstv %s676_s23  ;;  %v246_v23 = vstv %s678_s24  ;;  %s748_s13 = sld [smem:[#allocation2 + $0xe]]  ;;  %s750_s14 = sld [smem:[#allocation2 + $0xf]] }
  0x28   : > { %v542_v26 = vrot.slane %v184_v18, 10  ;;  %v543_v27 = vrot.slane %v185_v19, 10  ;;  %v544_v28 = vrot.slane %v197_v20, 11  ;;  %v545_v29 = vrot.slane %v198_v21, 11 }
  0x29   : > { %v181_v24 = vadd.f32 %v540_v16, %v168_v9  ;;  %v182_v25 = vadd.f32 %v541_v17, %v169_v10  ;;  %v244_v31 = vmul.f32 %v243_v22, %v688_v6  ;;  %v245_v32 = vmul.f32 %v243_v22, %v690_v7 }
  0x2a   : > { %v247_v35 = vmul.f32 %v246_v23, %v688_v6  ;;  %v248_v36 = vmul.f32 %v246_v23, %v690_v7  ;;  %v259_v37 = vstv %s686_s29  ;;  %v272_v38 = vstv %s692_s30 }
  0x2b   : > { %v194_v33 = vadd.f32 %v542_v26, %v181_v24  ;;  %v195_v34 = vadd.f32 %v543_v27, %v182_v25  ;;  %v316_v39 = vstv %s694_s3  ;;  %v319_v40 = vstv %s700_s4 }
  0x2c   : > { %v550_v43 = vrot.slane %v247_v35, 9  ;;  %v551_v44 = vrot.slane %v248_v36, 9  ;;  %v260_v45 = vmul.f32 %v259_v37, %v688_v6  ;;  %v261_v46 = vmul.f32 %v259_v37, %v690_v7 }
  0x2d   : > { %v207_v41 = vadd.f32 %v544_v28, %v194_v33  ;;  %v208_v42 = vadd.f32 %v545_v29, %v195_v34  ;;  %v273_v47 = vmul.f32 %v272_v38, %v688_v6  ;;  %v274_v48 = vmul.f32 %v272_v38, %v690_v7 }
  0x2e   : > { %v257_v51 = vadd.f32 %v550_v43, %v244_v31  ;;  %v258_v52 = vadd.f32 %v551_v44, %v245_v32  ;;  %v552_v53 = vrot.slane %v260_v45, 10  ;;  %v553_v54 = vrot.slane %v261_v46, 10 }
  0x2f   : > { %v217_v49 = vrot.slane %v207_v41, %v702_v15  ;;  %v224_v50 = vrot.slane %v208_v42, %v702_v15  ;;  %v554_v55 = vrot.slane %v273_v47, 11  ;;  %v555_v56 = vrot.slane %v274_v48, 11 }
  0x30   : > { %v317_v58 = vmul.f32 %v316_v39, %v688_v6  ;;  %v318_v59 = vmul.f32 %v316_v39, %v690_v7  ;;  %v320_v60 = vmul.f32 %v319_v40, %v688_v6  ;;  %v270_v61 = vadd.f32 %v552_v53, %v257_v51 }
  0x31   : > { %v225_v57 = vcombine.low %v217_v49, %v224_v50  ;;  %v271_v62 = vadd.f32 %v553_v54, %v258_v52  ;;  %v321_v63 = vmul.f32 %v319_v40, %v690_v7  ;;  %v332_v0 = vstv %s716_s5 }
  0x32   : > { %v561_v2 = vrot.slane %v320_v60, 9  ;;  %v333_v3 = vmul.f32 %v332_v0, %v688_v6  ;;  %v334_v4 = vmul.f32 %v332_v0, %v690_v7  ;;  %v283_v5 = vadd.f32 %v554_v55, %v270_v61 }
  0x33   : > { %v232_v1 = vrot.slane %v225_v57, %v702_v15  ;;  %v284_v8 = vadd.f32 %v555_v56, %v271_v62  ;;  %v562_v9 = vrot.slane %v321_v63, 9  ;;  %v345_v10 = vstv %s722_s6 }
  0x34   : > { %v330_v11 = vadd.f32 %v561_v2, %v317_v58  ;;  %v563_v12 = vrot.slane %v333_v3, 10  ;;  %v564_v13 = vrot.slane %v334_v4, 10  ;;  %v346_v14 = vmul.f32 %v345_v10, %v688_v6 }
  0x35   : > { %238 = vst.msk [vmem:[%s741_s12] ss:$4 sm:$0xf] %vm710_vm0, %v232_v1  ;;  %v293_v16 = vrot.slane %v283_v5, %v702_v15  ;;  %v300_v17 = vrot.slane %v284_v8, %v702_v15  ;;  %v331_v18 = vadd.f32 %v562_v9, %v318_v59  ;;  %v347_v19 = vmul.f32 %v345_v10, %v690_v7 }
  0x36   : > { %v343_v20 = vadd.f32 %v563_v12, %v330_v11  ;;  %v565_v21 = vrot.slane %v346_v14, 11  ;;  %v389_v22 = vstv %s732_s7  ;;  %v392_v23 = vstv %s734_s8 }
  0x37   : > { %v301_v24 = vcombine.low %v293_v16, %v300_v17  ;;  %v344_v25 = vadd.f32 %v564_v13, %v331_v18  ;;  %v566_v26 = vrot.slane %v347_v19, 11  ;;  %v390_v27 = vmul.f32 %v389_v22, %v688_v6 }
  0x38   : > { %v356_v28 = vadd.f32 %v565_v21, %v343_v20  ;;  %v391_v29 = vmul.f32 %v389_v22, %v690_v7  ;;  %v393_v31 = vmul.f32 %v392_v23, %v688_v6  ;;  %v394_v32 = vmul.f32 %v392_v23, %v690_v7 }
  0x39   : > { %v308_v33 = vrot.slane %v301_v24, %v702_v15  ;;  %v357_v34 = vadd.f32 %v566_v26, %v344_v25  ;;  %v405_v35 = vstv %s748_s13  ;;  %v418_v36 = vstv %s750_s14 }
  0x3a   : > { %v366_v37 = vrot.slane %v356_v28, %v702_v15  ;;  %v572_v38 = vrot.slane %v393_v31, 9  ;;  %v573_v39 = vrot.slane %v394_v32, 9  ;;  %v406_v40 = vmul.f32 %v405_v35, %v688_v6 }
  0x3b   : > { %556 = vst.msk [vmem:[%s741_s12 + $0x1] ss:$4 sm:$0xf] %vm710_vm0, %v308_v33  ;;  %v373_v41 = vrot.slane %v357_v34, %v702_v15  ;;  %v407_v42 = vmul.f32 %v405_v35, %v690_v7  ;;  %v419_v43 = vmul.f32 %v418_v36, %v688_v6  ;;  %v420_v44 = vmul.f32 %v418_v36, %v690_v7 }
  0x3c   : > { %v403_v45 = vadd.f32 %v572_v38, %v390_v27  ;;  %v404_v46 = vadd.f32 %v573_v39, %v391_v29  ;;  %v574_v47 = vrot.slane %v406_v40, 10 }
  0x3d   : > { %v374_v48 = vcombine.low %v366_v37, %v373_v41  ;;  %v575_v49 = vrot.slane %v407_v42, 10  ;;  %v576_v50 = vrot.slane %v419_v43, 11  ;;  %v577_v51 = vrot.slane %v420_v44, 11 }
  0x3e   : > { %v416_v52 = vadd.f32 %v574_v47, %v403_v45 }
  0x3f   : > { %v381_v53 = vrot.slane %v374_v48, %v702_v15  ;;  %v417_v54 = vadd.f32 %v575_v49, %v404_v46 }
  0x40   : > { %v429_v55 = vadd.f32 %v576_v50, %v416_v52 }
  0x41   : > { %567 = vst.msk [vmem:[%s741_s12 + $0x2] ss:$4 sm:$0xf] %vm710_vm0, %v381_v53  ;;  %v430_v56 = vadd.f32 %v577_v51, %v417_v54 }
  0x42   : > { %v439_v6 = vrot.slane %v429_v55, %v702_v15 }
  0x43   : > { %v446_v7 = vrot.slane %v430_v56, %v702_v15 }
  0x45   : > { %v447_v57 = vcombine.low %v439_v6, %v446_v7 }
  0x47   : > { %v454_v58 = vrot.slane %v447_v57, %v702_v15 }
  0x49   : > { %578 = vst.msk [vmem:[%s741_s12 + $0x3] ss:$4 sm:$0xf] %vm710_vm0, %v454_v58 }
  0x4a PF: > { %s13_s9 = sadd.s32 1, %s626_s9  }
  0x4b   : > { %p10_p1 = scmp.ge.s32.totalorder %s13_s9, 4  }
  0x4d   :  { %12 = sbr.rel (!%p10_p1) target bundleno = 1 (0x1), region = 66 }
  0x54   :  { %480 = vsyncpa [#allocation3], 1 }
  0x55   :  { %482 = vsyncpa [#allocation3 + $0x1], 1 }

</bundles_post_ra>
